<compile_context>
chip_gen: v7x
topology: tpu7x:2x2x1
jax: 0.10.0
libtpu: 0.0.40
codegen_flags: <defaults>
</compile_context>

<pallas_src>
import jax
import jax.numpy as jnp
from jax import lax
from jax.experimental import pallas as pl
from jax.experimental.pallas import tpu as pltpu


def _round_up(x, m):
    return (x + m - 1) // m * m


def _cdiv(a, b):
    return -(-a // b)


def text_sentiment_kernel(text_ref, bag_ref, invlen_ref, ew_ref, bias_ref,
                          out_ref, acc_ref):
    """Grid = (bag blocks ["parallel"], vocab slabs ["arbitrary"]).

    text_ref   : (1, Tp)   int32  -- flat token ids (padding tokens = 0)
    bag_ref    : (1, Tp)   int32  -- bag id per token (padding tokens = -1)
    invlen_ref : (TB, 1)   f32    -- per-bag 1/len (0 for empty / padded bags)
    ew_ref     : (Vs, Cp)  f32    -- slab of emb_table @ fc_w.T (pre-folded)
    bias_ref   : (1, Cp)   f32
    out_ref    : (TB, Cp)  f32    -- distinct lane-dense block per bag block
    acc_ref    : (TB, Cp)  f32    -- VMEM accumulator across vocab slabs
    """
    i = pl.program_id(0)                       # bag-block axis
    k = pl.program_id(1)                       # vocab-slab reduction axis
    tb, _ = out_ref.shape
    t_pad = text_ref.shape[1]
    v_slab = ew_ref.shape[0]

    @pl.when(k == 0)
    def _init():
        acc_ref[...] = jnp.zeros_like(acc_ref)

    # Bag-membership selector; 0/1 is exact in bf16.
    row_ids = lax.broadcasted_iota(jnp.int32, (tb, t_pad), 0) + i * tb
    sel = (bag_ref[...] == row_ids).astype(jnp.bfloat16)             # (TB, Tp)

    # Vocab one-hot for this slab only.
    v_ids = lax.broadcasted_iota(jnp.int32, (v_slab, t_pad), 0) + k * v_slab
    onehot = (text_ref[...] == v_ids).astype(jnp.bfloat16)           # (Vs, Tp)

    # counts[j, v] = multiplicity of slab-token v inside bag j  (A @ B^T).
    counts = lax.dot_general(sel, onehot,
                             (((1,), (1,)), ((), ())),
                             preferred_element_type=jnp.float32)     # (TB, Vs)

    # Partial logits contribution of this vocab slab.
    acc_ref[...] += jnp.dot(counts, ew_ref[...],
                            preferred_element_type=jnp.float32)      # (TB, Cp)

    @pl.when(k == pl.num_programs(1) - 1)
    def _finalize():
        out_ref[...] = (acc_ref[...] * invlen_ref[...]
                        + bias_ref[...]).astype(out_ref.dtype)


def text_sentiment(text, offsets, emb_table, fc_w, fc_b,
                   *, block_b=128, vocab_slab=512):
    """Forward pass of TextSentiment: EmbeddingBag(mean) followed by Linear."""
    text = text.astype(jnp.int32)
    offsets = offsets.astype(jnp.int32)
    t_total = int(text.shape[0])
    batch = int(offsets.shape[0])
    vocab, dim = emb_table.shape
    num_class = fc_w.shape[0]

    tb = block_b
    b_pad = _round_up(max(batch, tb), tb)
    t_pad = _round_up(max(t_total, 128), 128)
    c_pad = _round_up(max(num_class, 128), 128)

    # Vocab slabbing: pad V to a multiple of 16 (bf16 sublane packing) and to a
    # whole number of equal slabs.
    v_pad = _round_up(max(vocab, 16), 16)
    n_slab = _cdiv(v_pad, vocab_slab)
    v_slab = _round_up(_cdiv(v_pad, n_slab), 16)
    v_pad = v_slab * n_slab

    # --- layout plumbing (done once in the wrapper, not per grid step) -------
    # CSR-style offsets -> per-token bag id (padding tokens get bag id -1).
    offsets_ext = jnp.concatenate([offsets, jnp.array([t_total], jnp.int32)])
    positions = jnp.arange(t_total, dtype=jnp.int32)
    bag_ids = (jnp.searchsorted(offsets_ext, positions, side="right") - 1
               ).astype(jnp.int32)

    text2d = jnp.zeros((1, t_pad), jnp.int32).at[0, :t_total].set(text)
    bag2d = jnp.full((1, t_pad), -1, jnp.int32).at[0, :t_total].set(bag_ids)

    # Per-bag 1/len; 0 for empty bags (matches EmbeddingBag mode='mean').
    lens = (offsets_ext[1:] - offsets_ext[:-1]).astype(jnp.float32)
    inv_len = jnp.where(lens > 0.0, 1.0 / jnp.maximum(lens, 1.0), 0.0)
    inv2d = jnp.zeros((b_pad, 1), jnp.float32).at[:batch, 0].set(inv_len)

    # Fold the Linear into the embedding table once: EW = E @ W^T  (V, C).
    ew = jnp.dot(emb_table.astype(jnp.float32), fc_w.astype(jnp.float32).T)
    ew_p = jnp.zeros((v_pad, c_pad), jnp.float32).at[:vocab, :num_class].set(ew)
    bias = jnp.zeros((1, c_pad), jnp.float32).at[0, :num_class].set(
        fc_b.astype(jnp.float32))

    grid = (b_pad // tb, v_pad // v_slab)

    cost = pl.CostEstimate(
        flops=(2 * b_pad * t_pad * v_pad          # counts matmul
               + 2 * b_pad * v_pad * c_pad),      # counts @ EW
        transcendentals=0,
        bytes_accessed=4 * (2 * t_pad + b_pad + v_pad * c_pad
                            + c_pad + b_pad * c_pad),
    )

    out = pl.pallas_call(
        text_sentiment_kernel,
        out_shape=jax.ShapeDtypeStruct((b_pad, c_pad), jnp.float32),
        grid_spec=pltpu.PrefetchScalarGridSpec(
            num_scalar_prefetch=0,
            grid=grid,
            in_specs=[
                pl.BlockSpec((1, t_pad), lambda i, k: (0, 0)),      # text
                pl.BlockSpec((1, t_pad), lambda i, k: (0, 0)),      # bag ids
                pl.BlockSpec((tb, 1), lambda i, k: (i, 0)),         # 1/len
                pl.BlockSpec((v_slab, c_pad), lambda i, k: (k, 0)), # EW slab
                pl.BlockSpec((1, c_pad), lambda i, k: (0, 0)),      # bias
            ],
            out_specs=pl.BlockSpec((tb, c_pad), lambda i, k: (i, 0)),
            scratch_shapes=[pltpu.VMEM((tb, c_pad), jnp.float32)],
        ),
        compiler_params=pltpu.CompilerParams(
            # bag-block axis shards across v7x's 2 TCs; vocab-slab axis is the
            # accumulated reduction and must stay "arbitrary".
            dimension_semantics=("parallel", "arbitrary"),
            vmem_limit_bytes=48 * 1024 * 1024,
        ),
        cost_estimate=cost,
    )(text2d, bag2d, inv2d, ew_p, bias)

    # Strip batch / class padding.
    return out[:batch, :num_class]


def reference(text, offsets, emb_table, fc_w, fc_b):
    t_total = text.shape[0]
    batch = offsets.shape[0]
    offsets_ext = jnp.concatenate([offsets, jnp.array([t_total], jnp.int32)])
    rows = []
    for b in range(batch):
        s, e = int(offsets_ext[b]), int(offsets_ext[b + 1])
        if e > s:
            rows.append(jnp.mean(emb_table[text[s:e]], axis=0))
        else:
            rows.append(jnp.zeros((emb_table.shape[1],), jnp.float32))
    embedded = jnp.stack(rows, axis=0)
    return embedded @ fc_w.T + fc_b


if __name__ == "__main__":
    vocab_size, embed_dim, num_class = 32, 64, 4

    key = jax.random.PRNGKey(0)
    k_emb, k_w, k_text = jax.random.split(key, 3)

    initrange = 0.5
    # embedding.weight.data.uniform_(-0.5, 0.5)
    emb_table = jax.random.uniform(k_emb, (vocab_size, embed_dim),
                                   jnp.float32, -initrange, initrange)
    # fc.weight.data.uniform_(-0.5, 0.5); fc.bias.data.zero_()
    fc_w = jax.random.uniform(k_w, (num_class, embed_dim),
                              jnp.float32, -initrange, initrange)
    fc_b = jnp.zeros((num_class,), jnp.float32)

    # Flat token stream + per-bag start offsets (EmbeddingBag (text, offsets)).
    total_tokens = 15
    text = jax.random.randint(k_text, (total_tokens,), 0, vocab_size, jnp.int32)
    # 4 bags; bag 1 is empty (offsets[1] == offsets[2]) to exercise that path.
    offsets = jnp.array([0, 3, 3, 12], jnp.int32)
    batch = offsets.shape[0]

    out = text_sentiment(text, offsets, emb_table, fc_w, fc_b)
    out = jax.block_until_ready(out)

    ref = reference(text, offsets, emb_table, fc_w, fc_b)
    assert out.shape == (batch, num_class)
    assert jnp.allclose(out, ref, atol=1e-4, rtol=1e-4), "mismatch vs reference"

    print("KERNEL_OK")
</pallas_src>

<mosaic_0001>
module attributes {stable_mosaic.version = 11 : i64} {
  func.func @text_sentiment_kernel(%arg0: i32, %arg1: i32, %arg2: memref<1x128xi32, #tpu.memory_space<vmem>>, %arg3: memref<1x128xi32, #tpu.memory_space<vmem>>, %arg4: memref<128x1xf32, #tpu.memory_space<vmem>>, %arg5: memref<32x128xf32, #tpu.memory_space<vmem>>, %arg6: memref<1x128xf32, #tpu.memory_space<vmem>>, %arg7: memref<128x128xf32, #tpu.memory_space<vmem>>, %arg8: memref<128x128xf32, #tpu.memory_space<vmem>>) attributes {dimension_semantics = [#tpu.dimension_semantics<parallel>, #tpu.dimension_semantics<arbitrary>], iteration_bounds = array<i64: 1, 1>, scalar_prefetch = 0 : i64, scratch_operands = 1 : i64, tpu.core_type = #tpu.core_type<tc>, window_params = [{pipeline_mode = #tpu.pipeline_mode<synchronous>, transform_indices = @transform_0, window_bounds = array<i64: 1, 128>}, {pipeline_mode = #tpu.pipeline_mode<synchronous>, transform_indices = @transform_1, window_bounds = array<i64: 1, 128>}, {transform_indices = @transform_2, window_bounds = array<i64: 128, 1>}, {transform_indices = @transform_3, window_bounds = array<i64: 32, 128>}, {pipeline_mode = #tpu.pipeline_mode<synchronous>, transform_indices = @transform_4, window_bounds = array<i64: 1, 128>}, {transform_indices = @transform_5, window_bounds = array<i64: 128, 128>}]} {
    %c0_i32 = arith.constant 0 : i32
    %0 = arith.cmpi eq, %arg1, %c0_i32 : i32
    %1 = arith.extui %0 : i1 to i32
    %c0_i32_0 = arith.constant 0 : i32
    %2 = arith.cmpi ne, %1, %c0_i32_0 : i32
    scf.if %2 {
      %cst_13 = arith.constant 0.000000e+00 : f32
      %32 = vector.broadcast %cst_13 : f32 to vector<128x128xf32>
      %c0_14 = arith.constant 0 : index
      %c0_15 = arith.constant 0 : index
      %33 = vector.load %arg8[%c0_14, %c0_15] : memref<128x128xf32, #tpu.memory_space<vmem>>, vector<128x128xf32>
      tpu.vector_store %arg8[%c0_14, %c0_15], %32 {strides = array<i32>} : memref<128x128xf32, #tpu.memory_space<vmem>>, vector<128x128xf32>,
    } else {
    }
    %3 = tpu.iota {dimensions = array<i32: 0>} : vector<128x128xi32>
    %c128_i32 = arith.constant 128 : i32
    %4 = arith.muli %arg0, %c128_i32 : i32
    %5 = vector.broadcast %4 : i32 to vector<128x128xi32>
    %6 = arith.addi %3, %5 : vector<128x128xi32>
    %c0 = arith.constant 0 : index
    %c0_1 = arith.constant 0 : index
    %7 = vector.load %arg3[%c0, %c0_1] : memref<1x128xi32, #tpu.memory_space<vmem>>, vector<1x128xi32>
    %8 = vector.broadcast %7 : vector<1x128xi32> to vector<128x128xi32>
    %9 = arith.cmpi eq, %8, %6 : vector<128x128xi32>
    %10 = arith.extui %9 : vector<128x128xi1> to vector<128x128xi32>
    %11 = arith.sitofp %10 : vector<128x128xi32> to vector<128x128xf32>
    %12 = arith.truncf %11 : vector<128x128xf32> to vector<128x128xbf16>
    %13 = tpu.iota {dimensions = array<i32: 0>} : vector<32x128xi32>
    %c32_i32 = arith.constant 32 : i32
    %14 = arith.muli %arg1, %c32_i32 : i32
    %15 = vector.broadcast %14 : i32 to vector<32x128xi32>
    %16 = arith.addi %13, %15 : vector<32x128xi32>
    %c0_2 = arith.constant 0 : index
    %c0_3 = arith.constant 0 : index
    %17 = vector.load %arg2[%c0_2, %c0_3] : memref<1x128xi32, #tpu.memory_space<vmem>>, vector<1x128xi32>
    %18 = vector.broadcast %17 : vector<1x128xi32> to vector<32x128xi32>
    %19 = arith.cmpi eq, %18, %16 : vector<32x128xi32>
    %20 = arith.extui %19 : vector<32x128xi1> to vector<32x128xi32>
    %21 = arith.sitofp %20 : vector<32x128xi32> to vector<32x128xf32>
    %22 = arith.truncf %21 : vector<32x128xf32> to vector<32x128xbf16>
    %cst = arith.constant dense<0.000000e+00> : vector<128x32xf32>
    %23 = tpu.matmul %12, %22, %cst {dimension_numbers = #tpu.dot_dimension_numbers<[1], [1], [0], [0], [0, 0, 1, 0], [], []>} : vector<128x128xbf16>, vector<32x128xbf16>, vector<128x32xf32> -> vector<128x32xf32>
    %c0_4 = arith.constant 0 : index
    %c0_5 = arith.constant 0 : index
    %24 = vector.load %arg8[%c0_4, %c0_5] : memref<128x128xf32, #tpu.memory_space<vmem>>, vector<128x128xf32>
    %c0_6 = arith.constant 0 : index
    %c0_7 = arith.constant 0 : index
    %25 = vector.load %arg5[%c0_6, %c0_7] : memref<32x128xf32, #tpu.memory_space<vmem>>, vector<32x128xf32>
    %cst_8 = arith.constant dense<0.000000e+00> : vector<128x128xf32>
    %26 = tpu.matmul %23, %25, %cst_8 {dimension_numbers = #tpu.dot_dimension_numbers<[1], [0], [0], [1], [0, 0, 1, 1], [], []>} : vector<128x32xf32>, vector<32x128xf32>, vector<128x128xf32> -> vector<128x128xf32>
    %27 = arith.addf %24, %26 : vector<128x128xf32>
    %c0_9 = arith.constant 0 : index
    %c0_10 = arith.constant 0 : index
    %28 = vector.load %arg8[%c0_9, %c0_10] : memref<128x128xf32, #tpu.memory_space<vmem>>, vector<128x128xf32>
    tpu.vector_store %arg8[%c0_9, %c0_10], %27 {strides = array<i32>} : memref<128x128xf32, #tpu.memory_space<vmem>>, vector<128x128xf32>,
    %c0_i32_11 = arith.constant 0 : i32
    %29 = arith.cmpi eq, %arg1, %c0_i32_11 : i32
    %30 = arith.extui %29 : i1 to i32
    %c0_i32_12 = arith.constant 0 : i32
    %31 = arith.cmpi ne, %30, %c0_i32_12 : i32
    scf.if %31 {
      %c0_13 = arith.constant 0 : index
      %c0_14 = arith.constant 0 : index
      %32 = vector.load %arg8[%c0_13, %c0_14] : memref<128x128xf32, #tpu.memory_space<vmem>>, vector<128x128xf32>
      %c0_15 = arith.constant 0 : index
      %c0_16 = arith.constant 0 : index
      %33 = vector.load %arg4[%c0_15, %c0_16] : memref<128x1xf32, #tpu.memory_space<vmem>>, vector<128x1xf32>
      %34 = vector.broadcast %33 : vector<128x1xf32> to vector<128x128xf32>
      %35 = arith.mulf %32, %34 : vector<128x128xf32>
      %c0_17 = arith.constant 0 : index
      %c0_18 = arith.constant 0 : index
      %36 = vector.load %arg6[%c0_17, %c0_18] : memref<1x128xf32, #tpu.memory_space<vmem>>, vector<1x128xf32>
      %37 = vector.broadcast %36 : vector<1x128xf32> to vector<128x128xf32>
      %38 = arith.addf %35, %37 : vector<128x128xf32>
      %c0_19 = arith.constant 0 : index
      %c0_20 = arith.constant 0 : index
      %39 = vector.load %arg7[%c0_19, %c0_20] : memref<128x128xf32, #tpu.memory_space<vmem>>, vector<128x128xf32>
      tpu.vector_store %arg7[%c0_19, %c0_20], %38 {strides = array<i32>} : memref<128x128xf32, #tpu.memory_space<vmem>>, vector<128x128xf32>,
    } else {
    }
    return
  }
  func.func @transform_0(%arg0: i32, %arg1: i32) -> (i32, i32) {
    %c0_i32 = arith.constant 0 : i32
    %c0_i32_0 = arith.constant 0 : i32
    %c0_i32_1 = arith.constant 0 : i32
    return %c0_i32, %c0_i32_0 : i32, i32
  }
  func.func @transform_1(%arg0: i32, %arg1: i32) -> (i32, i32) {
    %c0_i32 = arith.constant 0 : i32
    %c0_i32_0 = arith.constant 0 : i32
    %c0_i32_1 = arith.constant 0 : i32
    return %c0_i32, %c0_i32_0 : i32, i32
  }
  func.func @transform_2(%arg0: i32, %arg1: i32) -> (i32, i32) {
    %c0_i32 = arith.constant 0 : i32
    %c0_i32_0 = arith.constant 0 : i32
    return %arg0, %c0_i32 : i32, i32
  }
  func.func @transform_3(%arg0: i32, %arg1: i32) -> (i32, i32) {
    %c0_i32 = arith.constant 0 : i32
    %c0_i32_0 = arith.constant 0 : i32
    return %arg1, %c0_i32 : i32, i32
  }
  func.func @transform_4(%arg0: i32, %arg1: i32) -> (i32, i32) {
    %c0_i32 = arith.constant 0 : i32
    %c0_i32_0 = arith.constant 0 : i32
    %c0_i32_1 = arith.constant 0 : i32
    return %c0_i32, %c0_i32_0 : i32, i32
  }
  func.func @transform_5(%arg0: i32, %arg1: i32) -> (i32, i32) {
    %c0_i32 = arith.constant 0 : i32
    %c0_i32_0 = arith.constant 0 : i32
    return %arg0, %c0_i32 : i32, i32
  }
}

</mosaic_0001>

<bundles_post_ra>
// kernel: tpu_custom_call.1
= control target key start
LH: loop header
LB: loop body
LE: loop exit
PB: predicated region body
PF: predicated region fallthrough
CT: control target
= control target key end

     0   :  { %v42_v0 = vlaneseq  ;;  %s1022_s0 = inlined_call_operand.vmem [shape: s32[1,128], index: 0, kind: input, shape index: {}]   ;;  %s1023_s1 = inlined_call_operand.vmem [shape: s32[1,128], index: 1, kind: input, shape index: {}]   ;;  %s1024_s2 = inlined_call_operand.vmem [shape: f32[128,1], index: 2, kind: input, shape index: {}]   ;;  %s1025_s3 = inlined_call_operand.vmem [shape: f32[32,128], index: 3, kind: input, shape index: {}]   ;;  %s1026_s4 = inlined_call_operand.vmem [shape: f32[1,128], index: 4, kind: input, shape index: {}]   ;;  %s1027_s5 = inlined_call_operand.hbm [shape: f32[128,128], index: 5, kind: output, shape index: {}]  }
   0x1   :  { %v709_v1 = vld [vmem:[%s1022_s0] ss:$0 sm:$0xff]  ;;  %v277_v3 = vld [vmem:[%s1025_s3 + $0x8] sm:$0xff] }
   0x2   :  { %v276_v2 = vld [vmem:[%s1025_s3] sm:$0xff] }
   0x3   :  { %10 = vsyncpa [#allocation4], 0  ;;  %v43_v4 = vshrl.u32 %v42_v0, 7  ;;  %v692_v5 = vld [vmem:[%s1023_s1] ss:$0 sm:$0xff]  ;;  %v833_v6 = vpack.c.bf16 %v277_v3, %v276_v2  ;;  %v278_v23 = vld [vmem:[%s1025_s3 + $0x10] sm:$0xff] }
   0x4   :  { %v872_v10 = vmov 1.0|1.0   ;;  %v279_v24 = vld [vmem:[%s1025_s3 + $0x18] sm:$0xff]  ;;  %v527_v26 = vld [vmem:[%s1024_s2 + $0x10] sm:$0xff]  ;;  %v525_v27 = vld [vmem:[%s1024_s2] sm:$0xff]  ;;  %v873_v28 = vmov 0  }
   0x5   :  { %v44_v7 = vadd.s32 8, %v43_v4  ;;  %vm149_vm0 = vcmp.eq.s32.totalorder %v709_v1, %v43_v4  ;;  %v45_v8 = vadd.s32 16, %v43_v4  ;;  %v46_v9 = vadd.s32 24, %v43_v4  ;;  %834 = vmatprep.subr.bf16.mxu1 %v833_v6  ;;  %847 = vset.pattern.permute.xlu1 %v873_v28  ;;  %v528_v29 = vld [vmem:[%s1024_s2 + $0x18] sm:$0xff]  ;;  %v526_v30 = vld [vmem:[%s1024_s2 + $0x8] sm:$0xff]  ;;  %v529_v32 = vld [vmem:[%s1024_s2 + $0x20] sm:$0xff] }
   0x6   :  { %vm82_vm1 = vcmp.eq.s32.totalorder %v692_v5, %v43_v4  ;;  %836 = vmatpush3.bf16.msra.mxu1 %v833_v6  ;;  %v47_v11 = vadd.s32 32, %v43_v4  ;;  %v48_v12 = vadd.s32 40, %v43_v4  ;;  %v49_v13 = vadd.s32 48, %v43_v4  ;;  %846 = vset.pattern.permute.xlu0 %v873_v28  ;;  %v530_v31 = vld [vmem:[%s1024_s2 + $0x28] sm:$0xff]  ;;  %v532_v33 = vld [vmem:[%s1024_s2 + $0x38] sm:$0xff]  ;;  %v531_v34 = vld [vmem:[%s1024_s2 + $0x30] sm:$0xff] }
   0x7   :  { %vm150_vm2 = vcmp.eq.s32.totalorder %v709_v1, %v44_v7  ;;  %vm151_vm3 = vcmp.eq.s32.totalorder %v709_v1, %v45_v8  ;;  %vm152_vm4 = vcmp.eq.s32.totalorder %v709_v1, %v46_v9  ;;  %vm83_vm5 = vcmp.eq.s32.totalorder %v692_v5, %v44_v7  ;;  %553 = vperm.xlu1 %847, %v527_v26   ;;  %v534_v35 = vld [vmem:[%s1024_s2 + $0x48] sm:$0xff]  ;;  %v533_v36 = vld [vmem:[%s1024_s2 + $0x40] sm:$0xff]  ;;  %v536_v37 = vld [vmem:[%s1024_s2 + $0x58] sm:$0xff] }
   0x8   :  { %vm714_vm6 = vmpackc.low %vm150_vm2, %vm149_vm0  ;;  %vm84_vm9 = vcmp.eq.s32.totalorder %v692_v5, %v45_v8  ;;  %vm85_vm10 = vcmp.eq.s32.totalorder %v692_v5, %v46_v9  ;;  %vm86_vm11 = vcmp.eq.s32.totalorder %v692_v5, %v47_v11  ;;  %vm87_vm12 = vcmp.eq.s32.totalorder %v692_v5, %v48_v12  ;;  %543 = vperm.xlu0 %846, %v525_v27   ;;  %v535_v38 = vld [vmem:[%s1024_s2 + $0x50] sm:$0xff]  ;;  %v538_v39 = vld [vmem:[%s1024_s2 + $0x68] sm:$0xff] }
   0x9   :  { %781 = vmatprep.subr.msk.bf16.mxu0 %vm714_vm6, %v872_v10  ;;  %vm716_vm7 = vmpackc.low %vm152_vm4, %vm151_vm3  ;;  %v50_v14 = vadd.s32 56, %v43_v4  ;;  %v51_v15 = vadd.s32 64, %v43_v4  ;;  %v52_v16 = vadd.s32 72, %v43_v4  ;;  %vm88_vm15 = vcmp.eq.s32.totalorder %v692_v5, %v49_v13  ;;  %v537_v40 = vld [vmem:[%s1024_s2 + $0x60] sm:$0xff]  ;;  %v540_v41 = vld [vmem:[%s1024_s2 + $0x78] sm:$0xff] }
   0xa   :  { %782 = vmatpush3.bf16.xpose.msk.msra.mxu0 %vm714_vm6, %v872_v10  ;;  %vm718_vm8 = vmpackc.low %vm83_vm5, %vm82_vm1  ;;  %v53_v17 = vadd.s32 80, %v43_v4  ;;  %v54_v18 = vadd.s32 88, %v43_v4  ;;  %v55_v19 = vadd.s32 96, %v43_v4  ;;  %v56_v20 = vadd.s32 104, %v43_v4  ;;  %v539_v42 = vld [vmem:[%s1024_s2 + $0x70] sm:$0xff] }
   0xb   :  { %783 = vmatprep.subr.msk.bf16.mxu0 %vm716_vm7, %v872_v10  ;;  %785 = vmatprep.mubr.msk.bf16.mxu0 %vm718_vm8, %v872_v10  ;;  %vm720_vm13 = vmpackc.low %vm85_vm10, %vm84_vm9  ;;  %vm89_vm0 = vcmp.eq.s32.totalorder %v692_v5, %v50_v14  ;;  %vm90_vm1 = vcmp.eq.s32.totalorder %v692_v5, %v51_v15  ;;  %vm91_vm2 = vcmp.eq.s32.totalorder %v692_v5, %v52_v16  ;;  %v57_v21 = vadd.s32 112, %v43_v4  ;;  %v992_v2 = vld [vmem:[%s1026_s4] ss:$0 sm:$0xff]  ;;  %s874_s4 = smov [#allocation3]  }
   0xc   :  { %vm722_vm14 = vmpackc.low %vm87_vm12, %vm86_vm11  ;;  %vm92_vm5 = vcmp.eq.s32.totalorder %v692_v5, %v53_v17  ;;  %vm93_vm6 = vcmp.eq.s32.totalorder %v692_v5, %v54_v18  ;;  %vm95_vm8 = vcmp.eq.s32.totalorder %v692_v5, %v56_v20  ;;  %v58_v22 = vadd.s32 120, %v43_v4  ;;  %558 = vperm.xlu1 %847, %v528_v29   ;;  %548 = vperm.xlu0 %846, %v526_v30   ;;  %s681_s8 = sshll.u32 %s874_s4, 4  ;;  %s682_s8 = int_to_ptr.vmem [resolvable:$true] %s681_s8 }
   0xd   :  { %vm724_vm3 = vmpackc.low %vm89_vm0, %vm88_vm15  ;;  %vm96_vm11 = vcmp.eq.s32.totalorder %v692_v5, %v57_v21  ;;  %v837_v25 = vpack.c.bf16 %v279_v24, %v278_v23  ;;  %s848_s3 = scalar_lea.vmem %s682_s8, 2048  ;;  %p853_p1 = scmp.lt.s32.totalorder %s682_s8, %s682_s8 }
   0xe   :  { %vm726_vm4 = vmpackc.low %vm91_vm2, %vm90_vm1  ;;  %vm97_vm12 = vcmp.eq.s32.totalorder %v692_v5, %v58_v22  ;;  %p849_p0 = scmp.ne.s32.totalorder %s682_s8, %s848_s3  ;;  %p854_p2 = scmp.lt.s32.totalorder %s848_s3, %s848_s3 }
   0xf   :  { %vm728_vm9 = vmpackc.low %vm93_vm6, %vm92_vm5  ;;  %838 = vmatprep.subr.bf16.mxu1 %v837_v25 }
  0x10   :  { %840 = vmatpush3.bf16.msra.mxu1 %v837_v25  ;;  %568 = vperm.xlu1 %847, %v530_v31   ;;  %p855_p3 = por %p854_p2, %p853_p1 }
  0x11   :  { %563 = vperm.xlu0 %846, %v529_v32  }
  0x12   :  { %784 = vmatpush3.bf16.xpose.msk.msra.mxu0 %vm716_vm7, %v872_v10  ;;  %vm94_vm7 = vcmp.eq.s32.totalorder %v692_v5, %v55_v19  ;;  %p856_p4 = pnand %p855_p3, %p849_p0 }
  0x13   :  { %vm730_vm10 = vmpackc.low %vm95_vm8, %vm94_vm7 }
  0x14   :  { %578 = vperm.xlu1 %847, %v532_v33  }
  0x15   :  { %573 = vperm.xlu0 %846, %v531_v34  }
  0x18   :  { %588 = vperm.xlu1 %847, %v534_v35  }
  0x19   :  { %786 = vmatmul.mubr.msk.bf16.vlgmr.msra.gmra.mrb[0].mxu0 %vm720_vm13, %v872_v10  ;;  %vm732_vm13 = vmpackc.low %vm97_vm12, %vm96_vm11  ;;  %583 = vperm.xlu0 %846, %v533_v36  }
  0x1a   :  { %789 = vmatprep.mubr.msk.bf16.mxu0 %vm722_vm14, %v872_v10  ;;  %vm280_vm14 = vcmask 261120  }
  0x1c   :  { %598 = vperm.xlu1 %847, %v536_v37  }
  0x1d   :  { %593 = vperm.xlu0 %846, %v535_v38  }
  0x20   :  { %608 = vperm.xlu1 %847, %v538_v39  }
  0x21   :  { %790 = vmatmul.mubr.msk.bf16.gmra.mrb[4].mxu0 %vm724_vm3, %v872_v10  ;;  %603 = vperm.xlu0 %846, %v537_v40  }
  0x22   :  { %793 = vmatprep.mubr.msk.bf16.mxu0 %vm726_vm4, %v872_v10 }
  0x24   :  { %618 = vperm.xlu1 %847, %v540_v41  }
  0x25   :  { %613 = vperm.xlu0 %846, %v539_v42  }
  0x29   :  { %794 = vmatmul.mubr.msk.bf16.gmra.mrb[8].mxu0 %vm728_vm9, %v872_v10 }
  0x2a   :  { %797 = vmatprep.mubr.msk.bf16.mxu0 %vm730_vm10, %v872_v10 }
  0x31   :  { %798 = vmatmul.mubr.msk.bf16.gmra.mrb[12].mxu0 %vm732_vm13, %v872_v10 }
  0x86   :  { %v554_v59 = vpop.permute.xlu1 %553 }
  0x87   :  { %v544_v60 = vpop.permute.xlu0 %543 }
  0x8b   :  { %v559_v61 = vpop.permute.xlu1 %558  ;;  %v549_v62 = vpop.permute.xlu0 %548 }
  0x8f   :  { %v569_v63 = vpop.permute.xlu1 %568 }
  0x90   :  { %v564_v0 = vpop.permute.xlu0 %563 }
  0x93   :  { %v579_v7 = vpop.permute.xlu1 %578 }
  0x94   :  { %v574_v10 = vpop.permute.xlu0 %573 }
  0x97   :  { %v589_v19 = vpop.permute.xlu1 %588 }
  0x98   :  { %v584_v21 = vpop.permute.xlu0 %583 }
  0x9b   :  { %v599_v29 = vpop.permute.xlu1 %598 }
  0x9c   :  { %v594_v32 = vpop.permute.xlu0 %593 }
  0x9f   :  { %v609_v41 = vpop.permute.xlu1 %608 }
  0xec   :  { %v787_v43 = vpop.f32.mrb[0].mxu0 }
  0xed   :  { %v197_v44 = vpop.f32.mrb[1].mxu0 }
  0xee   :  { %v788_v45 = vpop.f32.mrb[2].mxu0  ;;  %809 = vmatprep.mubr.msk.f32.mxu1 %vm280_vm14, %v197_v44 }
  0xef   :  { %v200_v46 = vpop.f32.mrb[3].mxu0 }
  0xf0   :  { %810 = vmatmul.mubr.msk.f32.vlgmr.msra.gmra.mrb[0].mxu1 %vm280_vm14, %v200_v46 }
  0xf1   :  { %812 = vmatprep.mubr.msk.f32.mxu1 %vm280_vm14, %v787_v43  ;;  %v604_v43 = vpop.permute.xlu0 %603 }
  0xf4   :  { %v791_v47 = vpop.f32.mrb[4].mxu0  ;;  %813 = vmatmul.mubr.msk.f32.gmra.mrb[2].mxu1 %vm280_vm14, %v788_v45 }
  0xf5   :  { %v213_v48 = vpop.f32.mrb[5].mxu0 }
  0xf6   :  { %v792_v49 = vpop.f32.mrb[6].mxu0  ;;  %815 = vmatprep.mubr.msk.f32.mxu1 %vm280_vm14, %v213_v48 }
  0xf7   :  { %v216_v50 = vpop.f32.mrb[7].mxu0 }
  0xf8   :  { %816 = vmatmul.mubr.msk.f32.gmra.mrb[4].mxu1 %vm280_vm14, %v216_v50 }
  0xf9   :  { %818 = vmatprep.mubr.msk.f32.mxu1 %vm280_vm14, %v791_v47 }
  0xfc   :  { %v795_v51 = vpop.f32.mrb[8].mxu0  ;;  %819 = vmatmul.mubr.msk.f32.gmra.mrb[6].mxu1 %vm280_vm14, %v792_v49 }
  0xfd   :  { %v229_v52 = vpop.f32.mrb[9].mxu0 }
  0xfe   :  { %v796_v53 = vpop.f32.mrb[10].mxu0  ;;  %821 = vmatprep.mubr.msk.f32.mxu1 %vm280_vm14, %v229_v52 }
  0xff   :  { %v232_v54 = vpop.f32.mrb[11].mxu0 }
 0x100   :  { %822 = vmatmul.mubr.msk.f32.gmra.mrb[8].mxu1 %vm280_vm14, %v232_v54  ;;  %v614_v54 = vpop.permute.xlu0 %613 }
 0x101   :  { %824 = vmatprep.mubr.msk.f32.mxu1 %vm280_vm14, %v795_v51  ;;  %v619_v51 = vpop.permute.xlu1 %618 }
 0x104   :  { %v799_v55 = vpop.f32.mrb[12].mxu0  ;;  %825 = vmatmul.mubr.msk.f32.gmra.mrb[10].mxu1 %vm280_vm14, %v796_v53 }
 0x105   :  { %v245_v56 = vpop.f32.mrb[13].mxu0 }
 0x106   :  { %v800_v57 = vpop.f32.mrb[14].mxu0  ;;  %827 = vmatprep.mubr.msk.f32.mxu1 %vm280_vm14, %v245_v56 }
 0x107   :  { %v248_v58 = vpop.f32.mrb[15].mxu0 }
 0x108   :  { %828 = vmatmul.mubr.msk.f32.gmra.mrb[12].mxu1 %vm280_vm14, %v248_v58 }
 0x109   :  { %830 = vmatprep.mubr.msk.f32.mxu1 %vm280_vm14, %v799_v55 }
 0x10c   :  { %831 = vmatmul.mubr.msk.f32.gmra.mrb[14].mxu1 %vm280_vm14, %v800_v57 }
 0x1c3   :  { %v811_v1 = vpop.f32.mrb[0].mxu1 }
 0x1c4   :  { %v622_v3 = vmul.f32 %v811_v1, %v549_v62  ;;  %v395_v4 = vpop.f32.mrb[1].mxu1 }
 0x1c5   :  { %v621_v5 = vmul.f32 %v544_v60, %v395_v4 }
 0x1c6   :  { %v645_v6 = vadd.f32 %v992_v2, %v622_v3 }
 0x1c7   :  { %v644_v8 = vadd.f32 %v992_v2, %v621_v5  ;;  %v814_v9 = vpop.f32.mrb[2].mxu1 }
 0x1c8   :  { %661 = vst [vmem:[#allocation3 + $0x8] sm:$0xff] %v645_v6  ;;  %v624_v11 = vmul.f32 %v814_v9, %v559_v61  ;;  %v405_v12 = vpop.f32.mrb[3].mxu1 }
 0x1c9   :  { %660 = vst [vmem:[#allocation3] sm:$0xff] %v644_v8  ;;  %v623_v13 = vmul.f32 %v554_v59, %v405_v12 }
 0x1ca   :  { %v647_v14 = vadd.f32 %v992_v2, %v624_v11 }
 0x1cb   :  { %v646_v15 = vadd.f32 %v992_v2, %v623_v13  ;;  %v817_v16 = vpop.f32.mrb[4].mxu1 }
 0x1cc   :  { %663 = vst [vmem:[#allocation3 + $0x18] sm:$0xff] %v647_v14  ;;  %v626_v17 = vmul.f32 %v817_v16, %v569_v63  ;;  %v415_v18 = vpop.f32.mrb[5].mxu1 }
 0x1cd   :  { %662 = vst [vmem:[#allocation3 + $0x10] sm:$0xff] %v646_v15  ;;  %v625_v20 = vmul.f32 %v564_v0, %v415_v18 }
 0x1ce   :  { %v649_v22 = vadd.f32 %v992_v2, %v626_v17 }
 0x1cf   :  { %v648_v23 = vadd.f32 %v992_v2, %v625_v20  ;;  %v820_v24 = vpop.f32.mrb[6].mxu1 }
 0x1d0   :  { %665 = vst [vmem:[#allocation3 + $0x28] sm:$0xff] %v649_v22  ;;  %v628_v25 = vmul.f32 %v820_v24, %v579_v7  ;;  %v425_v26 = vpop.f32.mrb[7].mxu1 }
 0x1d1   :  { %664 = vst [vmem:[#allocation3 + $0x20] sm:$0xff] %v648_v23  ;;  %v627_v27 = vmul.f32 %v574_v10, %v425_v26 }
 0x1d2   :  { %v651_v28 = vadd.f32 %v992_v2, %v628_v25 }
 0x1d3   :  { %v650_v30 = vadd.f32 %v992_v2, %v627_v27  ;;  %v823_v31 = vpop.f32.mrb[8].mxu1 }
 0x1d4   :  { %667 = vst [vmem:[#allocation3 + $0x38] sm:$0xff] %v651_v28  ;;  %v630_v33 = vmul.f32 %v823_v31, %v589_v19  ;;  %v435_v34 = vpop.f32.mrb[9].mxu1 }
 0x1d5   :  { %666 = vst [vmem:[#allocation3 + $0x30] sm:$0xff] %v650_v30  ;;  %v629_v35 = vmul.f32 %v584_v21, %v435_v34 }
 0x1d6   :  { %v653_v36 = vadd.f32 %v992_v2, %v630_v33 }
 0x1d7   :  { %v652_v37 = vadd.f32 %v992_v2, %v629_v35  ;;  %v826_v38 = vpop.f32.mrb[10].mxu1 }
 0x1d8   :  { %669 = vst [vmem:[#allocation3 + $0x48] sm:$0xff] %v653_v36  ;;  %v632_v39 = vmul.f32 %v826_v38, %v599_v29  ;;  %v445_v40 = vpop.f32.mrb[11].mxu1 }
 0x1d9   :  { %668 = vst [vmem:[#allocation3 + $0x40] sm:$0xff] %v652_v37  ;;  %v631_v42 = vmul.f32 %v594_v32, %v445_v40 }
 0x1da   :  { %v655_v44 = vadd.f32 %v992_v2, %v632_v39 }
 0x1db   :  { %v654_v45 = vadd.f32 %v992_v2, %v631_v42  ;;  %v829_v46 = vpop.f32.mrb[12].mxu1 }
 0x1dc   :  { %671 = vst [vmem:[#allocation3 + $0x58] sm:$0xff] %v655_v44  ;;  %v634_v47 = vmul.f32 %v829_v46, %v609_v41  ;;  %v455_v48 = vpop.f32.mrb[13].mxu1 }
 0x1dd   :  { %670 = vst [vmem:[#allocation3 + $0x50] sm:$0xff] %v654_v45  ;;  %v633_v49 = vmul.f32 %v604_v43, %v455_v48 }
 0x1de   :  { %v657_v50 = vadd.f32 %v992_v2, %v634_v47 }
 0x1df   :  { %v656_v52 = vadd.f32 %v992_v2, %v633_v49  ;;  %v832_v53 = vpop.f32.mrb[14].mxu1 }
 0x1e0   :  { %673 = vst [vmem:[#allocation3 + $0x68] sm:$0xff] %v657_v50  ;;  %v636_v55 = vmul.f32 %v832_v53, %v619_v51  ;;  %v465_v56 = vpop.f32.mrb[15].mxu1 }
 0x1e1   :  { %672 = vst [vmem:[#allocation3 + $0x60] sm:$0xff] %v656_v52  ;;  %v635_v57 = vmul.f32 %v614_v54, %v465_v56 }
 0x1e2   :  { %v659_v58 = vadd.f32 %v992_v2, %v636_v55 }
 0x1e3   :  { %v658_v59 = vadd.f32 %v992_v2, %v635_v57 }
 0x1e4   :  { %675 = vst [vmem:[#allocation3 + $0x78] sm:$0xff] %v659_v58 }
 0x1e5   :  { %674 = vst [vmem:[#allocation3 + $0x70] sm:$0xff] %v658_v59 }
 0x1e6   :  { %859 = shalt.err (!%p856_p4)
}
 0x1e7   :  { %s860_s11 = scalar_lea.hbm %s1027_s5, 2048 }
 0x1e8   :  { %p861_p5 = scmp.ne.s32.totalorder %s1027_s5, %s860_s11  ;;  %p864_p6 = scmp.lt.u32.totalorder %s860_s11, %s1027_s5 }
 0x1ea   :  { %p866_p7 = pnand %p864_p6, %p861_p5 }
 0x1ec   :  { %869 = shalt.err (!%p866_p7)
}
 0x1ed   :  { %s875_s16 = smov 128   ;;  %s876_s17 = smov 8  }
 0x1ee   :  { %687 = dma.vmem_to_hbm [thread:$0]  %s682_s8, 2048, %s1027_s5, [#allocation4], %s875_s16, %s875_s16, %s876_s17  }
 0x1ef   :  { %870 = dma.done.wait [#allocation4], 2048  }
 0x1f0   :  { %871 = vsyncadd [#allocation4], 4294965248 }
 0x1f1   :  { %691 = vsyncpa [#allocation4], 1 }

</bundles_post_ra>
